<compile_context>
chip_gen: v5e
topology: v5e:2x2
jax: 0.10.0
libtpu: 0.0.40
codegen_flags: <defaults>
</compile_context>

<pallas_src>
import math
from functools import partial

import jax
import jax.numpy as jnp
from jax.experimental import pallas as pl
from jax.experimental.pallas import tpu as pltpu


def _diffusion_gf_kernel(t_ref, wfull_ref, phase_ref, w1_ref, b1_ref,
                         w2_ref, b2_ref, out_ref):
    # t_ref:     (B, 1)        f32 diffusion steps (B padded to multiple of 8)
    # wfull_ref: (1, 2*half)   f32 = concat([W, W]) * 2*pi
    # phase_ref: (1, 2*half)   f32 = [0]*half + [pi/2]*half
    # w1_ref:    (2*half, P)   bf16 projection1 weight (in, out)
    # b1_ref:    (1, P)        f32 projection1 bias
    # w2_ref:    (P, P)        bf16 projection2 weight (in, out)
    # b2_ref:    (1, P)        f32 projection2 bias
    t = t_ref[...]                                            # (B, 1)

    # Fused Gaussian Fourier embedding: [sin(2*pi*t*W), cos(2*pi*t*W)]
    emb = jnp.sin(t * wfull_ref[...] + phase_ref[...])        # (B, 128) f32

    # Linear 1 + SiLU  (bf16 MXU operands, f32 accumulation & elementwise)
    h = jnp.dot(emb.astype(jnp.bfloat16), w1_ref[...],
                preferred_element_type=jnp.float32) + b1_ref[...]
    h = h * jax.nn.sigmoid(h)                                 # SiLU, f32

    # Linear 2 + SiLU
    o = jnp.dot(h.astype(jnp.bfloat16), w2_ref[...],
                preferred_element_type=jnp.float32) + b2_ref[...]
    o = o * jax.nn.sigmoid(o)                                 # SiLU, f32

    out_ref[...] = o.astype(out_ref.dtype)


def prepare_params(W, W1, b1, W2, b2):
    """One-time parameter preparation (layout, fused constants, bf16 weights).

    Do this once at module-construction time, NOT per forward call.
    """
    half = W.shape[0]
    w_full = (jnp.concatenate([W, W]).reshape(1, 2 * half).astype(jnp.float32)
              * (2.0 * math.pi))
    phase = jnp.concatenate([
        jnp.zeros((half,), jnp.float32),
        jnp.full((half,), 0.5 * math.pi, jnp.float32),
    ]).reshape(1, 2 * half)
    return {
        "w_full": w_full,                                   # (1, 2*half) f32
        "phase": phase,                                     # (1, 2*half) f32
        "W1": W1.astype(jnp.bfloat16),                      # (2*half, P) bf16
        "b1": b1.reshape(1, -1).astype(jnp.float32),        # (1, P) f32
        "W2": W2.astype(jnp.bfloat16),                      # (P, P) bf16
        "b2": b2.reshape(1, -1).astype(jnp.float32),        # (1, P) f32
    }


@jax.jit
def diffusion_gf_embedding(diffusion_step, params):
    """diffusion_step: (B,) -> (B, projection_dim) f32."""
    B = diffusion_step.shape[0]
    proj = params["W2"].shape[1]
    emb_dim = params["W1"].shape[0]

    # Pad batch to a multiple of 8 so sublane loads/stores are unmasked.
    Bp = ((B + 7) // 8) * 8
    t = diffusion_step.astype(jnp.float32).reshape(B, 1)
    if Bp != B:
        t = jnp.pad(t, ((0, Bp - B), (0, 0)))

    vmem_spec = pl.BlockSpec(memory_space=pltpu.MemorySpace.VMEM)

    cost = pl.CostEstimate(
        flops=2 * Bp * emb_dim * proj + 2 * Bp * proj * proj,
        transcendentals=Bp * (emb_dim + 2 * proj),          # sin + 2x sigmoid
        bytes_accessed=(params["W1"].size + params["W2"].size) * 2   # bf16 weights
                       + (params["b1"].size + params["b2"].size) * 4
                       + (params["w_full"].size + params["phase"].size) * 4
                       + Bp * 4 + Bp * proj * 4,
    )

    out = pl.pallas_call(
        _diffusion_gf_kernel,
        out_shape=jax.ShapeDtypeStruct((Bp, proj), jnp.float32),
        in_specs=[vmem_spec] * 7,
        out_specs=vmem_spec,
        cost_estimate=cost,
    )(t, params["w_full"], params["phase"], params["W1"], params["b1"],
      params["W2"], params["b2"])

    if Bp != B:
        out = out[:B]
    return out


def _reference(diffusion_step, W, W1, b1, W2, b2):
    """Plain-JAX f32 reference mirroring the PyTorch forward."""
    x_proj = diffusion_step[:, None] * W[None, :] * 2.0 * jnp.pi
    emb = jnp.concatenate([jnp.sin(x_proj), jnp.cos(x_proj)], axis=-1)
    h = emb @ W1 + b1
    h = h * jax.nn.sigmoid(h)
    o = h @ W2 + b2
    return o * jax.nn.sigmoid(o)


if __name__ == "__main__":
    # Module config (defaults of DiffusionGFEmbedding)
    embedding_dim = 128
    projection_dim = 128
    half = embedding_dim // 2
    B = 8  # batch of diffusion steps

    key = jax.random.PRNGKey(0)
    k_t, k_w, k_w1, k_b1, k_w2, k_b2 = jax.random.split(key, 6)

    # Deterministic synthetic parameters (shapes from __init__).
    diffusion_step = jax.random.uniform(k_t, (B,), dtype=jnp.float32) * 10.0
    W = jax.random.normal(k_w, (half,), dtype=jnp.float32)            # GF freqs, scale=1.0
    W1 = jax.random.normal(k_w1, (embedding_dim, projection_dim), dtype=jnp.float32) * 0.05
    b1 = jax.random.normal(k_b1, (projection_dim,), dtype=jnp.float32) * 0.05
    W2 = jax.random.normal(k_w2, (projection_dim, projection_dim), dtype=jnp.float32) * 0.05
    b2 = jax.random.normal(k_b2, (projection_dim,), dtype=jnp.float32) * 0.05

    # One-time parameter prep (hoisted out of the hot path).
    params = prepare_params(W, W1, b1, W2, b2)

    out = diffusion_gf_embedding(diffusion_step, params)
    out = jax.block_until_ready(out)

    ref = _reference(diffusion_step, W, W1, b1, W2, b2)
    assert out.shape == (B, projection_dim)
    # bf16 weights/activations feeding the MXU -> tolerance loosened vs pure-f32 ref.
    assert jnp.allclose(out, ref, atol=2e-2, rtol=2e-2), "mismatch vs reference"

    print("KERNEL_OK")
</pallas_src>

<mosaic_0001>
module attributes {stable_mosaic.version = 11 : i64} {
  func.func @_diffusion_gf_kernel(%arg0: memref<8x1xf32, #tpu.memory_space<vmem>>, %arg1: memref<1x128xf32, #tpu.memory_space<vmem>>, %arg2: memref<1x128xf32, #tpu.memory_space<vmem>>, %arg3: memref<128x128xbf16, #tpu.memory_space<vmem>>, %arg4: memref<1x128xf32, #tpu.memory_space<vmem>>, %arg5: memref<128x128xbf16, #tpu.memory_space<vmem>>, %arg6: memref<1x128xf32, #tpu.memory_space<vmem>>, %arg7: memref<8x128xf32, #tpu.memory_space<vmem>>) attributes {dimension_semantics = [], scalar_prefetch = 0 : i64, scratch_operands = 0 : i64, tpu.core_type = #tpu.core_type<tc>} {
    %c0 = arith.constant 0 : index
    %c0_0 = arith.constant 0 : index
    %0 = vector.load %arg0[%c0, %c0_0] : memref<8x1xf32, #tpu.memory_space<vmem>>, vector<8x1xf32>
    %c0_1 = arith.constant 0 : index
    %c0_2 = arith.constant 0 : index
    %1 = vector.load %arg1[%c0_1, %c0_2] : memref<1x128xf32, #tpu.memory_space<vmem>>, vector<1x128xf32>
    %2 = vector.broadcast %0 : vector<8x1xf32> to vector<8x128xf32>
    %3 = vector.broadcast %1 : vector<1x128xf32> to vector<8x128xf32>
    %4 = arith.mulf %2, %3 : vector<8x128xf32>
    %c0_3 = arith.constant 0 : index
    %c0_4 = arith.constant 0 : index
    %5 = vector.load %arg2[%c0_3, %c0_4] : memref<1x128xf32, #tpu.memory_space<vmem>>, vector<1x128xf32>
    %6 = vector.broadcast %5 : vector<1x128xf32> to vector<8x128xf32>
    %7 = arith.addf %4, %6 : vector<8x128xf32>
    %8 = math.sin %7 : vector<8x128xf32>
    %9 = arith.truncf %8 : vector<8x128xf32> to vector<8x128xbf16>
    %c0_5 = arith.constant 0 : index
    %c0_6 = arith.constant 0 : index
    %10 = vector.load %arg3[%c0_5, %c0_6] : memref<128x128xbf16, #tpu.memory_space<vmem>>, vector<128x128xbf16>
    %cst = arith.constant dense<0.000000e+00> : vector<8x128xf32>
    %11 = tpu.matmul %9, %10, %cst {dimension_numbers = #tpu.dot_dimension_numbers<[1], [0], [0], [1], [0, 0, 1, 1], [], []>} : vector<8x128xbf16>, vector<128x128xbf16>, vector<8x128xf32> -> vector<8x128xf32>
    %c0_7 = arith.constant 0 : index
    %c0_8 = arith.constant 0 : index
    %12 = vector.load %arg4[%c0_7, %c0_8] : memref<1x128xf32, #tpu.memory_space<vmem>>, vector<1x128xf32>
    %13 = vector.broadcast %12 : vector<1x128xf32> to vector<8x128xf32>
    %14 = arith.addf %11, %13 : vector<8x128xf32>
    %15 = arith.negf %14 : vector<8x128xf32>
    %16 = math.exp %15 : vector<8x128xf32>
    %cst_9 = arith.constant 1.000000e+00 : f32
    %17 = vector.broadcast %cst_9 : f32 to vector<8x128xf32>
    %18 = arith.addf %17, %16 : vector<8x128xf32>
    %19 = arith.divf %17, %18 : vector<8x128xf32>
    %20 = arith.mulf %14, %19 : vector<8x128xf32>
    %21 = arith.truncf %20 : vector<8x128xf32> to vector<8x128xbf16>
    %c0_10 = arith.constant 0 : index
    %c0_11 = arith.constant 0 : index
    %22 = vector.load %arg5[%c0_10, %c0_11] : memref<128x128xbf16, #tpu.memory_space<vmem>>, vector<128x128xbf16>
    %cst_12 = arith.constant dense<0.000000e+00> : vector<8x128xf32>
    %23 = tpu.matmul %21, %22, %cst_12 {dimension_numbers = #tpu.dot_dimension_numbers<[1], [0], [0], [1], [0, 0, 1, 1], [], []>} : vector<8x128xbf16>, vector<128x128xbf16>, vector<8x128xf32> -> vector<8x128xf32>
    %c0_13 = arith.constant 0 : index
    %c0_14 = arith.constant 0 : index
    %24 = vector.load %arg6[%c0_13, %c0_14] : memref<1x128xf32, #tpu.memory_space<vmem>>, vector<1x128xf32>
    %25 = vector.broadcast %24 : vector<1x128xf32> to vector<8x128xf32>
    %26 = arith.addf %23, %25 : vector<8x128xf32>
    %27 = arith.negf %26 : vector<8x128xf32>
    %28 = math.exp %27 : vector<8x128xf32>
    %cst_15 = arith.constant 1.000000e+00 : f32
    %29 = vector.broadcast %cst_15 : f32 to vector<8x128xf32>
    %30 = arith.addf %29, %28 : vector<8x128xf32>
    %31 = arith.divf %29, %30 : vector<8x128xf32>
    %32 = arith.mulf %26, %31 : vector<8x128xf32>
    %c0_16 = arith.constant 0 : index
    %c0_17 = arith.constant 0 : index
    %33 = vector.load %arg7[%c0_16, %c0_17] : memref<8x128xf32, #tpu.memory_space<vmem>>, vector<8x128xf32>
    tpu.vector_store %arg7[%c0_16, %c0_17], %32 {strides = array<i32>} : memref<8x128xf32, #tpu.memory_space<vmem>>, vector<8x128xf32>,
    return
  }
}

</mosaic_0001>

<bundles_post_ra>
// kernel: diffusion_gf_embedding.1
= control target key start
LH: loop header
LB: loop body
LE: loop exit
PB: predicated region body
PF: predicated region fallthrough
CT: control target
= control target key end

     0   :  { %12 = vsyncpa [#allocation3], 0  ;;  %s776_s0 = inlined_call_operand.vmem [shape: f32[8,1], index: 0, kind: input, shape index: {}]   ;;  %s777_s1 = inlined_call_operand.vmem [shape: f32[1,128], index: 1, kind: input, shape index: {}]   ;;  %s778_s2 = inlined_call_operand.vmem [shape: f32[1,128], index: 2, kind: input, shape index: {}]   ;;  %s779_s3 = inlined_call_operand.hbm [shape: bf16[128,128], index: 3, kind: input, shape index: {}]   ;;  %s780_s4 = inlined_call_operand.vmem [shape: f32[1,128], index: 4, kind: input, shape index: {}]   ;;  %s781_s5 = inlined_call_operand.hbm [shape: bf16[128,128], index: 5, kind: input, shape index: {}]   ;;  %s782_s6 = inlined_call_operand.vmem [shape: f32[1,128], index: 6, kind: input, shape index: {}]   ;;  %s783_s7 = inlined_call_operand.hbm [shape: f32[8,128], index: 7, kind: output, shape index: {}]  }
   0x1   :  { %13 = vsyncpa [#allocation6], 0 }
   0x2   :  { %14 = vsyncpa [#allocation4], 0  ;;  %s25_s26 = sshll.u32 %s779_s3, 4  ;;  %s641_s27 = smov [#allocation2]   ;;  %s26_s26 = int_to_ptr.hbm [resolvable:$true] %s25_s26 }
   0x3   :  { %s27_s28 = sshll.u32 %s641_s27, 4  ;;  %s40_s8 = sshll.u32 %s781_s5, 4  ;;  %s28_s28 = int_to_ptr.vmem [resolvable:$true] %s27_s28  ;;  %s41_s8 = int_to_ptr.hbm [resolvable:$true] %s40_s8 }
   0x4   :  { %s642_s9 = smov 64   ;;  %s643_s10 = smov 4  }
   0x5   :  { %33 = dma.hbm_to_vmem [thread:$0]  %s26_s26, 1024, %s28_s28, [#allocation3], %s642_s9, %s642_s9, %s643_s10  }
   0x6   :  { %s644_s11 = smov [#allocation5]  }
   0x7   :  { %s42_s12 = sshll.u32 %s644_s11, 4  ;;  %s43_s12 = int_to_ptr.vmem [resolvable:$true] %s42_s12 }
   0x8   :  { %48 = dma.hbm_to_vmem [thread:$0]  %s41_s8, 1024, %s43_s12, [#allocation6], %s642_s9, %s642_s9, %s643_s10  }
   0x9   :  { %635 = dma.done.wait [#allocation3], 1024  }
   0xa   :  { %636 = vsyncadd [#allocation3], 4294966272 }
   0xb   :  { %637 = dma.done.wait [#allocation6], 1024  }
   0xc   :  { %638 = vsyncadd [#allocation6], 4294966272  ;;  %v645_v0 = vmov 0   ;;  %v59_v1 = vld [vmem:[%s776_s0] sm:$0xff]  ;;  %v529_v2 = vld [vmem:[#allocation2 + $0x38] sm:$0xff]  ;;  %s442_s20 = sshll.u32 %s783_s7, 4  ;;  %s443_s20 = int_to_ptr.hbm [resolvable:$true] %s442_s20 }
   0xd   :  { %550 = vset.pattern.permute.xlu0 %v645_v0  ;;  %299 = vmatpush.bf16.msra.mxu0 %v529_v2  ;;  %v528_v3 = vld [vmem:[#allocation2 + $0x30] sm:$0xff]  ;;  %v551_v4 = vld [vmem:[%s777_s1] ss:$0 sm:$0xff]  ;;  %v527_v5 = vld [vmem:[#allocation2 + $0x28] sm:$0xff]  ;;  %v646_v26 = vmov 2102212464  }
   0xe   :  { %63 = vperm.xlu0 %550, %v59_v1   ;;  %v552_v6 = vld [vmem:[%s778_s2] ss:$0 sm:$0xff]  ;;  %v525_v12 = vld [vmem:[#allocation2 + $0x18] sm:$0xff]  ;;  %v524_v15 = vld [vmem:[#allocation2 + $0x10] sm:$0xff]  ;;  %v647_v28 = vmov 920167782  }
   0xf   :  { %v526_v9 = vld [vmem:[#allocation2 + $0x20] sm:$0xff]  ;;  %v523_v18 = vld [vmem:[#allocation2 + $0x8] sm:$0xff]  ;;  %v648_v31 = vmov 1326507024   ;;  %v649_v33 = vmov 683565275  }
  0x10   :  { %v522_v23 = vld [vmem:[#allocation2] sm:$0xff]  ;;  %v650_v35 = vmov 2475754826   ;;  %v651_v38 = vmov 2131351028  }
  0x11   :  { %300 = vmatpush.bf16.msra.mxu0 %v528_v3 }
  0x15   :  { %301 = vmatpush.bf16.msra.mxu0 %v527_v5 }
  0x19   :  { %302 = vmatpush.bf16.msra.mxu0 %v526_v9 }
  0x1d   :  { %303 = vmatpush.bf16.msra.mxu0 %v525_v12 }
  0x21   :  { %304 = vmatpush.bf16.msra.mxu0 %v524_v15 }
  0x25   :  { %305 = vmatpush.bf16.msra.mxu0 %v523_v18 }
  0x29   :  { %306 = vmatpush.bf16.msra.mxu0 %v522_v23 }
  0x80   :  { %v64_v7 = vpop.permute.xlu0 %63 }
  0x81   :  { %v69_v8 = vmul.f32 %v551_v4, %v64_v7 }
  0x83   :  { %v709_v10 = vadd.f32 %v552_v6, %v69_v8 }
  0x85   :  { %v78_v11 = vand.u32 2139095040, %v709_v10  ;;  %v75_v16 = vand.u32 2147483647, %v709_v10  ;;  %vm77_vm12 = vcmp.lt.s32.totalorder %v709_v10, 0 }
  0x87   :  { %v79_v13 = vshrl.u32 %v78_v11, 23  ;;  %v82_v19 = vand.u32 8388607, %v75_v16  ;;  %vm76_vm13 = vcmp.le.f32.partialorder %v75_v16, 0.7853982 }
  0x89   :  { %v453_v14 = vadd.s32 4294967169, %v79_v13  ;;  %v83_v24 = vor.u32 8388608, %v82_v19 }
  0x8b   :  { %v85_v17 = vadd.s32 1, %v453_v14  ;;  %v724_v45 = vshll.u32 %v83_v24, 8 }
  0x8d   :  { %vm86_vm0 = vcmp.gt.s32.totalorder %v85_v17, 0  ;;  %v124_v55 = vand.u32 65535, %v724_v45  ;;  %v125_v57 = vshrl.u32 %v724_v45, 16 }
  0x8e   :  { %v87_v20 = vsel %vm86_vm0, %v85_v17, 0 }
  0x8f   :  { %v89_v21 = vand.u32 31, %v87_v20  ;;  %v717_v25 = vshrl.u32 %v87_v20, 5 }
  0x91   :  { %v715_v22 = vsub.s32 32, %v89_v21  ;;  %v101_v27 = vshll.u32 %v646_v26, %v89_v21  ;;  %v104_v29 = vshll.u32 %v647_v28, %v89_v21  ;;  %v92_v34 = vshll.u32 %v649_v33, %v89_v21 }
  0x92   :  { %v95_v37 = vshll.u32 %v650_v35, %v89_v21  ;;  %v98_v40 = vshll.u32 %v651_v38, %v89_v21  ;;  %vm110_vm1 = vcmp.lt.s32.totalorder %v717_v25, 4  ;;  %vm107_vm2 = vcmp.lt.s32.totalorder %v717_v25, 1 }
  0x93   :  { %v102_v30 = vshrl.u32 %v647_v28, %v715_v22  ;;  %v105_v32 = vshrl.u32 %v648_v31, %v715_v22  ;;  %v93_v36 = vshrl.u32 %v650_v35, %v715_v22  ;;  %v96_v39 = vshrl.u32 %v651_v38, %v715_v22 }
  0x94   :  { %v99_v41 = vshrl.u32 %v646_v26, %v715_v22  ;;  %vm109_vm3 = vcmp.lt.s32.totalorder %v717_v25, 3  ;;  %vm108_vm4 = vcmp.lt.s32.totalorder %v717_v25, 2  ;;  %v91_v19 = vshrl.u32 %v649_v33, %v715_v22 }
  0x95   :  { %v103_v42 = vor.u32 %v102_v30, %v101_v27  ;;  %v106_v43 = vor.u32 %v105_v32, %v104_v29  ;;  %v94_v44 = vor.u32 %v93_v36, %v92_v34  ;;  %v97_v46 = vor.u32 %v96_v39, %v95_v37 }
  0x96   :  { %v100_v47 = vor.u32 %v99_v41, %v98_v40 }
  0x97   :  { %v116_v48 = vsel %vm110_vm1, %v103_v42, 920167782  ;;  %v120_v49 = vsel %vm110_vm1, %v106_v43, 1326507024  ;;  %v115_v50 = vsel %vm107_vm2, %v94_v44, %v97_v46  ;;  %v111_v27 = vsel %vm107_vm2, %v91_v19, %v94_v44 }
  0x98   :  { %v117_v51 = vsel %vm109_vm3, %v100_v47, %v116_v48  ;;  %v119_v52 = vsel %vm107_vm2, %v97_v46, %v100_v47  ;;  %v121_v54 = vsel %vm109_vm3, %v103_v42, %v120_v49  ;;  %v112_v15 = vsel %vm110_vm1, %v100_v47, 2102212464 }
  0x99   :  { %v118_v53 = vsel %vm108_vm4, %v115_v50, %v117_v51  ;;  %v122_v56 = vsel %vm108_vm4, %v119_v52, %v121_v54  ;;  %v113_v28 = vsel %vm109_vm3, %v97_v46, %v112_v15  ;;  %vm218_vm1 = vweird.f32 %v709_v10 }
  0x9a   :  { %v148_v58 = vand.u32 65535, %v118_v53  ;;  %v149_v59 = vshrl.u32 %v118_v53, 16  ;;  %v126_v60 = vand.u32 65535, %v122_v56  ;;  %v127_v61 = vshrl.u32 %v122_v56, 16 }
  0x9b   :  { %v114_v33 = vsel %vm108_vm4, %v111_v27, %v113_v28 }
  0x9c   :  { %v151_v62 = vmul.u32 %v149_v59, %v124_v55  ;;  %v152_v63 = vmul.u32 %v148_v58, %v125_v57  ;;  %v129_v1 = vmul.u32 %v127_v61, %v124_v55  ;;  %v130_v2 = vmul.u32 %v126_v60, %v125_v57 }
  0x9d   :  { %v150_v3 = vmul.u32 %v148_v58, %v124_v55  ;;  %v128_v5 = vmul.u32 %v126_v60, %v124_v55  ;;  %v153_v7 = vmul.u32 %v149_v59, %v125_v57  ;;  %v131_v8 = vmul.u32 %v127_v61, %v125_v57 }
  0x9e   :  { %v154_v4 = vshll.u32 %v151_v62, 16  ;;  %v132_v6 = vshll.u32 %v129_v1, 16  ;;  %v156_v9 = vshll.u32 %v152_v63, 16  ;;  %v134_v12 = vshll.u32 %v130_v2, 16 }
  0x9f   :  { %v155_v24 = vshrl.u32 %v151_v62, 16  ;;  %v133_v29 = vshrl.u32 %v129_v1, 16  ;;  %v157_v31 = vshrl.u32 %v152_v63, 16  ;;  %v135_v34 = vshrl.u32 %v130_v2, 16 }
  0xa0   :  { %vm158_vm5 = vc.u32 %v150_v3, %v154_v4  ;;  %v160_v11 = vadd.s32 %v154_v4, %v150_v3  ;;  %vm136_vm6 = vc.u32 %v128_v5, %v132_v6  ;;  %v138_v13 = vadd.s32 %v132_v6, %v128_v5 }
  0xa1   :  { %v159_v14 = vsel %vm158_vm5, 1, %v645_v0  ;;  %v137_v17 = vsel %vm136_vm6, 1, %v645_v0  ;;  %v168_v38 = vmul.u32 %v724_v45, %v114_v33  ;;  %v532_v33 = vld [vmem:[#allocation5 + $0x10] sm:$0xff] }
  0xa2   :  { %v161_v18 = vadd.s32 %v159_v14, %v153_v7  ;;  %vm162_vm7 = vc.u32 %v160_v11, %v156_v9  ;;  %v139_v20 = vadd.s32 %v137_v17, %v131_v8  ;;  %vm140_vm8 = vc.u32 %v138_v13, %v134_v12 }
  0xa3   :  { %v163_v21 = vsel %vm162_vm7, 1, %v645_v0  ;;  %v141_v23 = vsel %vm140_vm8, 1, %v645_v0  ;;  %v164_v0 = vadd.s32 %v160_v11, %v156_v9 }
  0xa4   :  { %v165_v26 = vadd.s32 %v163_v21, %v161_v18  ;;  %v143_v30 = vadd.s32 %v141_v23, %v139_v20 }
  0xa6   :  { %v166_v32 = vadd.s32 %v165_v26, %v155_v24  ;;  %v144_v22 = vadd.s32 %v143_v30, %v133_v29  ;;  %v537_v30 = vld [vmem:[#allocation5 + $0x38] sm:$0xff] }
  0xa7   :  { %401 = vmatpush.bf16.msra.mxu1 %v537_v30 }
  0xa8   :  { %v167_v35 = vadd.s32 %v166_v32, %v157_v31  ;;  %v145_v36 = vadd.s32 %v144_v22, %v135_v34  ;;  %v536_v31 = vld [vmem:[#allocation5 + $0x30] sm:$0xff]  ;;  %v535_v32 = vld [vmem:[#allocation5 + $0x28] sm:$0xff]  ;;  %v534_v34 = vld [vmem:[#allocation5 + $0x20] sm:$0xff] }
  0xa9   :  { %v533_v22 = vld [vmem:[#allocation5 + $0x18] sm:$0xff] }
  0xaa   :  { %v171_v37 = vadd.s32 1, %v167_v35  ;;  %vm170_vm9 = vc.u32 %v145_v36, %v164_v0  ;;  %v169_v50 = vadd.s32 %v164_v0, %v145_v36  ;;  %v530_v36 = vld [vmem:[#allocation5] sm:$0xff] }
  0xab   :  { %402 = vmatpush.bf16.msra.mxu1 %v536_v31 }
  0xac   :  { %v172_v39 = vsel %vm170_vm9, %v171_v37, %v167_v35  ;;  %v531_v35 = vld [vmem:[#allocation5 + $0x8] sm:$0xff] }
  0xad   :  { %v173_v40 = vadd.s32 %v172_v39, %v168_v38 }
  0xaf   :  { %v174_v41 = vadd.s32 536870912, %v173_v40  ;;  %403 = vmatpush.bf16.msra.mxu1 %v535_v32 }
  0xb1   :  { %v175_v42 = vshrl.u32 %v174_v41, 30 }
  0xb3   :  { %v176_v43 = vshll.u32 %v175_v42, 30  ;;  %v199_v63 = vsub.s32 4, %v175_v42  ;;  %404 = vmatpush.bf16.msra.mxu1 %v534_v34 }
  0xb5   :  { %v177_v44 = vsub.s32 %v173_v40, %v176_v43  ;;  %v200_v5 = vsel %vm77_vm12, %v199_v63, %v175_v42 }
  0xb6   :  { %v202_v8 = vsel %vm76_vm13, 0, %v200_v5 }
  0xb7   :  { %vm178_vm10 = vcmp.lt.s32.totalorder %v177_v44, 0  ;;  %v179_v46 = vsub.s32 0, %v177_v44  ;;  %v219_v14 = vadd.s32 3, %v202_v8  ;;  %405 = vmatpush.bf16.msra.mxu1 %v533_v22 }
  0xb9   :  { %v180_v47 = vsel %vm178_vm10, %v179_v46, %v177_v44  ;;  %v220_v19 = vand.u32 3, %v219_v14 }
  0xba   :  { %v181_v48 = vclz %v180_v47 }
  0xbb   :  { %vm222_vm14 = vcmp.eq.s32.totalorder %v220_v19, 0  ;;  %vm225_vm15 = vcmp.eq.s32.totalorder %v220_v19, 2  ;;  %vm221_vm0 = vcmp.lt.s32.totalorder %v220_v19, 2  ;;  %406 = vmatpush.bf16.msra.mxu1 %v532_v33 }
  0xbc   :  { %v454_v49 = vadd.s32 4294967294, %v181_v48 }
  0xbe   :  { %vm455_vm11 = vcmp.lt.s32.totalorder %v454_v49, 0 }
  0xbf   :  { %v184_v25 = vsel %vm455_vm11, 0, %v454_v49  ;;  %407 = vmatpush.bf16.msra.mxu1 %v531_v35 }
  0xc0   :  { %v185_v51 = vsub.s32 32, %v184_v25  ;;  %v189_v52 = vsub.s32 4294967266, %v184_v25  ;;  %v186_v53 = vshll.u32 %v177_v44, %v184_v25 }
  0xc2   :  { %v187_v54 = vshrl.u32 %v169_v50, %v185_v51  ;;  %v190_v45 = vadd.s32 127, %v189_v52 }
  0xc3   :  { %408 = vmatpush.bf16.msra.mxu1 %v530_v36 }
  0xc4   :  { %v188_v55 = vor.u32 %v187_v54, %v186_v53  ;;  %v191_v56 = vshll.u32 %v190_v45, 23  ;;  %v554_v54 = vld [vmem:[%s782_s6] ss:$0 sm:$0xff]  ;;  %s652_s6 = smov [#allocation7]  }
  0xc5   :  { %s440_s17 = sshll.u32 %s652_s6, 4  ;;  %s441_s17 = int_to_ptr.vmem [resolvable:$true] %s440_s17 }
  0xc6   :  { %v192_v57 = vor.u32 4788187, %v191_v56  ;;  %v195_v59 = vcvt.s32.f32 %v188_v55 }
  0xc8   :  { %v193_v58 = vand.u32 2147483647, %v192_v57 }
  0xca   :  { %v196_v60 = vmul.f32 %v195_v59, %v193_v58 }
  0xcc   :  { %v197_v61 = vxor.u32 2147483648, %v196_v60 }
  0xce   :  { %v198_v62 = vsel %vm77_vm12, %v197_v61, %v196_v60 }
  0xcf   :  { %v201_v1 = vsel %vm76_vm13, %v709_v10, %v198_v62  ;;  %v553_v10 = vld [vmem:[%s780_s4] ss:$0 sm:$0xff] }
  0xd0   :  { %v203_v2 = vmul.f32 %v201_v1, %v201_v1 }
  0xd2   :  { %v204_v3 = vmul.f32 -0.001358992, %v203_v2  ;;  %v211_v4 = vmul.f32 -0.00019511016, %v203_v2 }
  0xd4   :  { %v205_v6 = vadd.f32 0.041655596, %v204_v3  ;;  %v212_v7 = vadd.f32 0.008332121, %v211_v4 }
  0xd6   :  { %v206_v9 = vmul.f32 %v205_v6, %v203_v2  ;;  %v213_v11 = vmul.f32 %v212_v7, %v203_v2 }
  0xd8   :  { %v207_v12 = vadd.f32 -0.4999988, %v206_v9  ;;  %v214_v13 = vadd.f32 -0.16666654, %v213_v11 }
  0xda   :  { %v208_v15 = vmul.f32 %v207_v12, %v203_v2  ;;  %v215_v17 = vmul.f32 %v214_v13, %v203_v2 }
  0xdc   :  { %v209_v18 = vadd.f32 1.0, %v208_v15  ;;  %v216_v16 = vadd.f32 1.0, %v215_v17 }
  0xde   :  { %v217_v20 = vmul.f32 %v216_v16, %v201_v1  ;;  %v226_v21 = vxor.u32 2147483648, %v209_v18 }
  0xe0   :  { %v223_v23 = vxor.u32 2147483648, %v217_v20  ;;  %v227_v26 = vsel %vm225_vm15, %v226_v21, %v217_v20 }
  0xe2   :  { %v224_v24 = vsel %vm222_vm14, %v209_v18, %v223_v23 }
  0xe3   :  { %v228_v27 = vsel %vm221_vm0, %v224_v24, %v227_v26 }
  0xe4   :  { %v229_v28 = vsel %vm218_vm1, nan, %v228_v27 }
  0xe5   :  { %v230_v29 = vpack.c.bf16 %v229_v28, %v229_v28 }
  0xe7   :  { %307 = vmatmul.bf16.vlgmr.msra.gmra.mxu0 %v230_v29 }
 0x164   :  { %v308_v0 = vpop.f32.mrf.mxu0 }
 0x165   :  { %v309_v37 = vadd.f32 %v553_v10, %v308_v0 }
 0x167   :  { %v488_v38 = vmul.f32 -1.442695, %v309_v37 }
 0x169   :  { %555 = vpow2.f32 %v488_v38 }
 0x16c   :  { %v310_v39 = vpop.f32.mrf.mxu0 }
 0x16f   :  { %v556_v40 = vpop.eup %555 }
 0x170   :  { %v315_v41 = vadd.f32 1.0, %v556_v40 }
 0x172   :  { %557 = vrcp.f32 %v315_v41  ;;  %v327_v46 = vand.u32 2147483648, %v315_v41  ;;  %v325_v48 = vand.u32 2147483647, %v315_v41  ;;  %vm321_vm3 = vweird.f32 %v315_v41 }
 0x174   :  { %v328_v25 = vor.u32 1.1754944e-38, %v327_v46  ;;  %vm326_vm5 = vcmp.eq.f32.partialorder %v325_v48, 8.507059e+37 }
 0x178   :  { %v558_v42 = vpop.eup %557 }
 0x179   :  { %v317_v43 = vmul.f32 %v558_v42, %v315_v41  ;;  %vm322_vm2 = vweird.f32 %v558_v42 }
 0x17a   :  { %vm323_vm4 = vmor %vm321_vm3, %vm322_vm2 }
 0x17b   :  { %v318_v44 = vsub.f32 1.0, %v317_v43 }
 0x17d   :  { %v319_v47 = vmul.f32 %v558_v42, %v318_v44 }
 0x17f   :  { %v320_v49 = vadd.f32 %v558_v42, %v319_v47 }
 0x181   :  { %v324_v50 = vsel %vm323_vm4, %v558_v42, %v320_v49 }
 0x182   :  { %v329_v51 = vsel %vm326_vm5, %v328_v25, %v324_v50 }
 0x183   :  { %v331_v52 = vmul.f32 %v329_v51, %v309_v37 }
 0x185   :  { %v332_v53 = vpack.c.bf16 %v331_v52, %v331_v52 }
 0x187   :  { %409 = vmatmul.bf16.vlgmr.msra.gmra.mxu1 %v332_v53 }
 0x204   :  { %v410_v45 = vpop.f32.mrf.mxu1 }
 0x205   :  { %v411_v55 = vadd.f32 %v554_v54, %v410_v45 }
 0x207   :  { %v521_v56 = vmul.f32 -1.442695, %v411_v55 }
 0x209   :  { %559 = vpow2.f32 %v521_v56 }
 0x20c   :  { %v412_v57 = vpop.f32.mrf.mxu1 }
 0x20f   :  { %v560_v58 = vpop.eup %559 }
 0x210   :  { %v417_v59 = vadd.f32 1.0, %v560_v58 }
 0x212   :  { %561 = vrcp.f32 %v417_v59  ;;  %v429_v63 = vand.u32 2147483648, %v417_v59  ;;  %v427_v2 = vand.u32 2147483647, %v417_v59  ;;  %vm423_vm7 = vweird.f32 %v417_v59 }
 0x214   :  { %v430_v4 = vor.u32 1.1754944e-38, %v429_v63  ;;  %vm428_vm9 = vcmp.eq.f32.partialorder %v427_v2, 8.507059e+37 }
 0x218   :  { %v562_v60 = vpop.eup %561 }
 0x219   :  { %v419_v61 = vmul.f32 %v562_v60, %v417_v59  ;;  %vm424_vm6 = vweird.f32 %v562_v60 }
 0x21a   :  { %vm425_vm8 = vmor %vm423_vm7, %vm424_vm6 }
 0x21b   :  { %v420_v62 = vsub.f32 1.0, %v419_v61 }
 0x21d   :  { %v421_v1 = vmul.f32 %v562_v60, %v420_v62 }
 0x21f   :  { %v422_v3 = vadd.f32 %v562_v60, %v421_v1 }
 0x221   :  { %v426_v5 = vsel %vm425_vm8, %v562_v60, %v422_v3 }
 0x222   :  { %v431_v6 = vsel %vm428_vm9, %v430_v4, %v426_v5 }
 0x223   :  { %v433_v7 = vmul.f32 %v431_v6, %v411_v55 }
 0x225   :  { %434 = vst [vmem:[#allocation7] sm:$0xff] %v433_v7 }
 0x226   :  { %445 = dma.vmem_to_hbm [thread:$0]  %s441_s17, 128, %s443_s20, [#allocation4]  }
 0x227   :  { %639 = dma.done.wait [#allocation4], 128  }
 0x228   :  { %640 = vsyncadd [#allocation4], 4294967168 }
 0x229   :  { %450 = vsyncpa [#allocation3], 1 }
 0x22a   :  { %451 = vsyncpa [#allocation6], 1 }
 0x22b   :  { %452 = vsyncpa [#allocation4], 1 }

</bundles_post_ra>
